<compile_context>
chip_gen: v7x
topology: tpu7x:2x2x1
jax: 0.10.0
libtpu: 0.0.40
codegen_flags: <defaults>
</compile_context>

<pallas_src>
import math

import jax
import jax.numpy as jnp
from jax.experimental import pallas as pl
from jax.experimental.pallas import tpu as pltpu

num_bond_type = 6
num_bond_direction = 3
num_atom_type = 120
num_chirality_tag = 3
BN_EPS = 1e-5


def _round_up(v, m):
    return ((v + m - 1) // m) * m


def _vmem_limit_bytes(N, Dp, Hp):
    b = 0
    b += N * N * 2                # A scratch (single-buffered, bf16)
    b += N * Dp * 2               # running h scratch (bf16)
    b += 2 * N * Dp * 4           # aggE block (double-buffered, f32)
    b += 2 * Dp * Hp * 2          # W1 (bf16)
    b += 2 * Hp * Dp * 2          # W2 (bf16)
    b += 2 * Hp * 4               # b1
    b += 2 * 3 * Dp * 4           # b2/gamma/beta
    b += 2 * N * Dp * 4           # output block
    # 2x margin for layout padding + headroom; floor at default scoped limit,
    # cap below v7x's 64 MiB physical VMEM.
    return int(min(max(2 * b + (4 << 20), 32 << 20), 60 << 20))


# ---------------------------------------------------------------------------
# Fused Pallas kernel: all GIN layers (aggregate + MLP + BatchNorm + ReLU)
# ---------------------------------------------------------------------------
def fused_gnn_kernel(h0_hbm, A_hbm, aggE_ref, W1_ref, b1_ref, W2_ref,
                     vecs_ref, out_ref, A_scr, h_scr):
    l = pl.program_id(0)
    L = pl.num_programs(0)

    @pl.when(l == 0)
    def _init():
        # One-time DMA of the layer-invariant operands into *single-buffered*
        # VMEM scratch (avoids the default double buffer on the N^2 term).
        pltpu.sync_copy(A_hbm, A_scr)
        pltpu.sync_copy(h0_hbm, h_scr)

    # GIN aggregation (aggr='add'):
    #   aggr[i] = sum_{e: tgt(e)=i} (h[src(e)] + edge_embedding[e])
    # The edge-embedding part does not depend on h -> precomputed aggE bias.
    aggr = (jnp.dot(A_scr[...], h_scr[...], preferred_element_type=jnp.float32)
            + aggE_ref[0])

    # update(): mlp = Linear(D, 2D) -> ReLU -> Linear(2D, D)
    hid = jnp.maximum(
        jnp.dot(aggr.astype(jnp.bfloat16), W1_ref[0],
                preferred_element_type=jnp.float32) + b1_ref[0],
        0.0)
    vecs = vecs_ref[0]                                  # (3, Dp): b2, gamma, beta
    mlp_out = (jnp.dot(hid.astype(jnp.bfloat16), W2_ref[0],
                       preferred_element_type=jnp.float32) + vecs[0:1, :])

    # BatchNorm1d, training mode (batch stats, biased variance, eps=1e-5),
    # fused into a single FMA pass over the NxDp tile.
    mean = jnp.mean(mlp_out, axis=0, keepdims=True)
    var = jnp.mean((mlp_out - mean) ** 2, axis=0, keepdims=True)
    s = vecs[1:2, :] * jax.lax.rsqrt(var + BN_EPS)      # gamma * inv_std (1xDp)
    t = vecs[2:3, :] - mean * s                         # beta - mean * s (1xDp)
    h_bn = mlp_out * s + t

    # dropout(p=0.0) is identity; ReLU on all but last layer; JK='last'.
    @pl.when(l != L - 1)
    def _carry():
        h_scr[...] = jnp.maximum(h_bn, 0.0).astype(jnp.bfloat16)

    @pl.when(l == L - 1)
    def _final():
        out_ref[...] = h_bn


def gnn_pallas(h0, A, aggE, W1s, b1s, W2s, vecs):
    L, _, Hp = b1s.shape
    N, Dp = h0.shape
    return pl.pallas_call(
        fused_gnn_kernel,
        out_shape=jax.ShapeDtypeStruct((N, Dp), jnp.float32),
        grid_spec=pltpu.PrefetchScalarGridSpec(
            num_scalar_prefetch=0,
            grid=(L,),
            in_specs=[
                pl.BlockSpec(memory_space=pl.ANY),               # h0 (HBM, copied once)
                pl.BlockSpec(memory_space=pl.ANY),               # A  (HBM, copied once)
                pl.BlockSpec((1, N, Dp), lambda l: (l, 0, 0)),   # agg_e per layer
                pl.BlockSpec((1, Dp, Hp), lambda l: (l, 0, 0)),  # W1
                pl.BlockSpec((1, 1, Hp), lambda l: (l, 0, 0)),   # b1
                pl.BlockSpec((1, Hp, Dp), lambda l: (l, 0, 0)),  # W2
                pl.BlockSpec((1, 3, Dp), lambda l: (l, 0, 0)),   # b2/gamma/beta
            ],
            out_specs=pl.BlockSpec((N, Dp), lambda l: (0, 0)),
            scratch_shapes=[
                pltpu.VMEM((N, N), jnp.bfloat16),    # A, single-buffered
                pltpu.VMEM((N, Dp), jnp.bfloat16),   # running h (bf16)
            ],
        ),
        compiler_params=pltpu.CompilerParams(
            dimension_semantics=("arbitrary",),      # layers are sequential
            vmem_limit_bytes=_vmem_limit_bytes(N, Dp, Hp),
        ),
    )(h0, A, aggE, W1s, b1s, W2s, vecs)


# ---------------------------------------------------------------------------
# Parameter init (deterministic, synthetic)
# ---------------------------------------------------------------------------
def xavier_uniform(key, shape):
    fan_in, fan_out = shape[0], shape[1]
    a = math.sqrt(6.0 / (fan_in + fan_out))
    return jax.random.uniform(key, shape, jnp.float32, -a, a)


def init_params(key, num_layer, emb_dim):
    keys = jax.random.split(key, 2 + 6 * num_layer)
    params = {
        'x_emb1': xavier_uniform(keys[0], (num_atom_type, emb_dim)),
        'x_emb2': xavier_uniform(keys[1], (num_chirality_tag, emb_dim)),
        'layers': [],
    }
    for l in range(num_layer):
        k = keys[2 + 6 * l: 2 + 6 * (l + 1)]
        params['layers'].append({
            'edge_emb1': xavier_uniform(k[0], (num_bond_type, emb_dim)),
            'edge_emb2': xavier_uniform(k[1], (num_bond_direction, emb_dim)),
            'W1': xavier_uniform(k[2], (emb_dim, 2 * emb_dim)),
            'b1': 0.01 * jax.random.normal(k[3], (2 * emb_dim,), jnp.float32),
            'W2': xavier_uniform(k[4], (2 * emb_dim, emb_dim)),
            'b2': 0.01 * jax.random.normal(k[5], (emb_dim,), jnp.float32),
            'gamma': jnp.ones((emb_dim,), jnp.float32),
            'beta': jnp.zeros((emb_dim,), jnp.float32),
        })
    return params


# ---------------------------------------------------------------------------
# GNN forward (glue in plain JAX, fused hot path in Pallas)
# ---------------------------------------------------------------------------
def gnn_forward(params, x, edge_index, edge_attr, num_layer, emb_dim):
    N = x.shape[0]
    D = emb_dim
    Dp = _round_up(max(D, 128), 128)           # lane-dense feature dim
    Hp = _round_up(max(2 * D, 128), 128)       # lane-dense hidden dim

    # add_self_loops + self_loop_attr ([:,0]=4)  (glue)
    self_loops = jnp.stack([jnp.arange(N), jnp.arange(N)])
    edge_index_full = jnp.concatenate([edge_index, self_loops], axis=1)
    self_loop_attr = jnp.zeros((N, 2), dtype=edge_attr.dtype).at[:, 0].set(4)
    edge_attr_full = jnp.concatenate([edge_attr, self_loop_attr], axis=0)
    src, tgt = edge_index_full[0], edge_index_full[1]

    # Dense self-loop-augmented adjacency counting matrix.
    # Values are small integer counts -> exact in bf16.
    A = jnp.zeros((N, N), jnp.float32).at[tgt, src].add(1.0).astype(jnp.bfloat16)

    # Per-layer edge aggregation precomputed in glue (independent of h).
    aggE = []
    for p in params['layers']:
        Eemb = (p['edge_emb1'][edge_attr_full[:, 0]]
                + p['edge_emb2'][edge_attr_full[:, 1]])
        aggE.append(jax.ops.segment_sum(Eemb, tgt, num_segments=N))
    aggE = jnp.pad(jnp.stack(aggE), ((0, 0), (0, 0), (0, Dp - D)))  # [L, N, Dp] f32

    # Initial node embedding (glue gather), lane-padded, bf16 (it is only
    # consumed as a bf16 MXU operand inside the kernel).
    h0 = params['x_emb1'][x[:, 0]] + params['x_emb2'][x[:, 1]]
    h0 = jnp.pad(h0, ((0, 0), (0, Dp - D))).astype(jnp.bfloat16)

    # Stacked, zero-padded per-layer weights (bf16 for MXU operands).
    layers = params['layers']
    W1s = jnp.stack([jnp.pad(p['W1'], ((0, Dp - D), (0, Hp - 2 * D)))
                     for p in layers]).astype(jnp.bfloat16)
    b1s = jnp.stack([jnp.pad(p['b1'], (0, Hp - 2 * D)).reshape(1, -1)
                     for p in layers])
    W2s = jnp.stack([jnp.pad(p['W2'], ((0, Hp - 2 * D), (0, Dp - D)))
                     for p in layers]).astype(jnp.bfloat16)
    # b2, gamma, beta merged into a single (L, 3, Dp) operand.
    vecs = jnp.stack([
        jnp.stack([jnp.pad(p['b2'], (0, Dp - D)),
                   jnp.pad(p['gamma'], (0, Dp - D)),
                   jnp.pad(p['beta'], (0, Dp - D))], axis=0)
        for p in layers])

    out_pad = gnn_pallas(h0, A, aggE, W1s, b1s, W2s, vecs)
    return out_pad[:, :D]


# Pure-JAX f32 reference (scatter form) for a correctness check.
def gnn_forward_ref(params, x, edge_index, edge_attr, num_layer):
    N = x.shape[0]
    self_loops = jnp.stack([jnp.arange(N), jnp.arange(N)])
    edge_index_full = jnp.concatenate([edge_index, self_loops], axis=1)
    self_loop_attr = jnp.zeros((N, 2), dtype=edge_attr.dtype).at[:, 0].set(4)
    edge_attr_full = jnp.concatenate([edge_attr, self_loop_attr], axis=0)
    src, tgt = edge_index_full[0], edge_index_full[1]

    h = params['x_emb1'][x[:, 0]] + params['x_emb2'][x[:, 1]]
    for layer in range(num_layer):
        p = params['layers'][layer]
        Eemb = (p['edge_emb1'][edge_attr_full[:, 0]]
                + p['edge_emb2'][edge_attr_full[:, 1]])
        msg = h[src] + Eemb
        aggr = jax.ops.segment_sum(msg, tgt, num_segments=N)
        hid = jnp.maximum(aggr @ p['W1'] + p['b1'], 0.0)
        out = hid @ p['W2'] + p['b2']
        mean = jnp.mean(out, axis=0, keepdims=True)
        var = jnp.mean((out - mean) ** 2, axis=0, keepdims=True)
        h = (out - mean) * jax.lax.rsqrt(var + BN_EPS) * p['gamma'] + p['beta']
        if layer != num_layer - 1:
            h = jnp.maximum(h, 0.0)
    return h


if __name__ == "__main__":
    num_layer = 2
    emb_dim = 32
    N = 16

    key = jax.random.PRNGKey(0)
    kp, kx1, kx2, ka1, ka2 = jax.random.split(key, 5)
    params = init_params(kp, num_layer, emb_dim)

    # node features: [atom_type, chirality_tag]
    x = jnp.stack([
        jax.random.randint(kx1, (N,), 0, num_atom_type),
        jax.random.randint(kx2, (N,), 0, num_chirality_tag),
    ], axis=1).astype(jnp.int32)

    # edges: bidirectional ring over N nodes
    i = jnp.arange(N)
    edge_index = jnp.concatenate([
        jnp.stack([i, (i + 1) % N]),
        jnp.stack([(i + 1) % N, i]),
    ], axis=1).astype(jnp.int32)
    E = edge_index.shape[1]
    edge_attr = jnp.stack([
        jax.random.randint(ka1, (E,), 0, num_bond_type),
        jax.random.randint(ka2, (E,), 0, num_bond_direction),
    ], axis=1).astype(jnp.int32)

    out = gnn_forward(params, x, edge_index, edge_attr, num_layer, emb_dim)
    out = jax.block_until_ready(out)

    ref = gnn_forward_ref(params, x, edge_index, edge_attr, num_layer)
    assert out.shape == (N, emb_dim)
    # bf16 MXU operands (f32 accumulation) + BatchNorm amplification -> looser
    # tolerance than a pure-f32 comparison.
    assert jnp.allclose(out, ref, atol=5e-2, rtol=5e-2), "mismatch vs reference"

    print("KERNEL_OK")
</pallas_src>

<mosaic_0001>
module attributes {stable_mosaic.version = 11 : i64} {
  func.func @fused_gnn_kernel(%arg0: i32, %arg1: memref<16x128xbf16, #tpu.memory_space<any>>, %arg2: memref<16x16xbf16, #tpu.memory_space<any>>, %arg3: memref<1x16x128xf32, #tpu.memory_space<vmem>>, %arg4: memref<1x128x128xbf16, #tpu.memory_space<vmem>>, %arg5: memref<1x1x128xf32, #tpu.memory_space<vmem>>, %arg6: memref<1x128x128xbf16, #tpu.memory_space<vmem>>, %arg7: memref<1x3x128xf32, #tpu.memory_space<vmem>>, %arg8: memref<16x128xf32, #tpu.memory_space<vmem>>, %arg9: memref<16x16xbf16, #tpu.memory_space<vmem>>, %arg10: memref<16x128xbf16, #tpu.memory_space<vmem>>) attributes {dimension_semantics = [#tpu.dimension_semantics<arbitrary>], iteration_bounds = array<i64: 2>, scalar_prefetch = 0 : i64, scratch_operands = 2 : i64, tpu.core_type = #tpu.core_type<tc>, window_params = [{}, {}, {transform_indices = @transform_2, window_bounds = array<i64: 1, 16, 128>}, {transform_indices = @transform_3, window_bounds = array<i64: 1, 128, 128>}, {transform_indices = @transform_4, window_bounds = array<i64: 1, 1, 128>}, {transform_indices = @transform_5, window_bounds = array<i64: 1, 128, 128>}, {transform_indices = @transform_6, window_bounds = array<i64: 1, 3, 128>}, {pipeline_mode = #tpu.pipeline_mode<synchronous>, transform_indices = @transform_7, window_bounds = array<i64: 16, 128>}]} {
    %c0_i32 = arith.constant 0 : i32
    %0 = arith.cmpi eq, %arg0, %c0_i32 : i32
    %1 = arith.extui %0 : i1 to i32
    %c0_i32_0 = arith.constant 0 : i32
    %2 = arith.cmpi ne, %1, %c0_i32_0 : i32
    scf.if %2 {
      "tpu.region"() ({
        %57 = tpu.sem_alloc : memref<!tpu.dma_semaphore, #tpu.memory_space<semaphore_mem>>
        tpu.enqueue_dma source(%arg2 : memref<16x16xbf16, #tpu.memory_space<any>>) target(%arg9 : memref<16x16xbf16, #tpu.memory_space<vmem>>) target_semaphore(%57 : memref<!tpu.dma_semaphore, #tpu.memory_space<semaphore_mem>>)
        tpu.wait_dma2 semaphore(%57 : memref<!tpu.dma_semaphore, #tpu.memory_space<semaphore_mem>>) src(%arg2 : memref<16x16xbf16, #tpu.memory_space<any>>) dst(%arg9 : memref<16x16xbf16, #tpu.memory_space<vmem>>)
        tpu.yield
      }) : () -> ()
      "tpu.region"() ({
        %57 = tpu.sem_alloc : memref<!tpu.dma_semaphore, #tpu.memory_space<semaphore_mem>>
        tpu.enqueue_dma source(%arg1 : memref<16x128xbf16, #tpu.memory_space<any>>) target(%arg10 : memref<16x128xbf16, #tpu.memory_space<vmem>>) target_semaphore(%57 : memref<!tpu.dma_semaphore, #tpu.memory_space<semaphore_mem>>)
        tpu.wait_dma2 semaphore(%57 : memref<!tpu.dma_semaphore, #tpu.memory_space<semaphore_mem>>) src(%arg1 : memref<16x128xbf16, #tpu.memory_space<any>>) dst(%arg10 : memref<16x128xbf16, #tpu.memory_space<vmem>>)
        tpu.yield
      }) : () -> ()
    } else {
    }
    %c0 = arith.constant 0 : index
    %c0_1 = arith.constant 0 : index
    %3 = vector.load %arg9[%c0, %c0_1] : memref<16x16xbf16, #tpu.memory_space<vmem>>, vector<16x16xbf16>
    %c0_2 = arith.constant 0 : index
    %c0_3 = arith.constant 0 : index
    %4 = vector.load %arg10[%c0_2, %c0_3] : memref<16x128xbf16, #tpu.memory_space<vmem>>, vector<16x128xbf16>
    %cst = arith.constant dense<0.000000e+00> : vector<16x128xf32>
    %5 = tpu.matmul %3, %4, %cst {dimension_numbers = #tpu.dot_dimension_numbers<[1], [0], [0], [1], [0, 0, 1, 1], [], []>} : vector<16x16xbf16>, vector<16x128xbf16>, vector<16x128xf32> -> vector<16x128xf32>
    %c0_4 = arith.constant 0 : index
    %c0_5 = arith.constant 0 : index
    %c0_6 = arith.constant 0 : index
    %6 = vector.load %arg3[%c0_4, %c0_5, %c0_6] : memref<1x16x128xf32, #tpu.memory_space<vmem>>, vector<1x16x128xf32>
    %7 = vector.shape_cast %6 : vector<1x16x128xf32> to vector<16x128xf32>
    %8 = arith.addf %5, %7 : vector<16x128xf32>
    %9 = arith.truncf %8 : vector<16x128xf32> to vector<16x128xbf16>
    %c0_7 = arith.constant 0 : index
    %c0_8 = arith.constant 0 : index
    %c0_9 = arith.constant 0 : index
    %10 = vector.load %arg4[%c0_7, %c0_8, %c0_9] : memref<1x128x128xbf16, #tpu.memory_space<vmem>>, vector<1x128x128xbf16>
    %11 = vector.shape_cast %10 : vector<1x128x128xbf16> to vector<128x128xbf16>
    %cst_10 = arith.constant dense<0.000000e+00> : vector<16x128xf32>
    %12 = tpu.matmul %9, %11, %cst_10 {dimension_numbers = #tpu.dot_dimension_numbers<[1], [0], [0], [1], [0, 0, 1, 1], [], []>} : vector<16x128xbf16>, vector<128x128xbf16>, vector<16x128xf32> -> vector<16x128xf32>
    %c0_11 = arith.constant 0 : index
    %c0_12 = arith.constant 0 : index
    %c0_13 = arith.constant 0 : index
    %13 = vector.load %arg5[%c0_11, %c0_12, %c0_13] : memref<1x1x128xf32, #tpu.memory_space<vmem>>, vector<1x1x128xf32>
    %14 = vector.shape_cast %13 : vector<1x1x128xf32> to vector<1x128xf32>
    %15 = vector.broadcast %14 : vector<1x128xf32> to vector<16x128xf32>
    %16 = arith.addf %12, %15 : vector<16x128xf32>
    %cst_14 = arith.constant 0.000000e+00 : f32
    %17 = vector.broadcast %cst_14 : f32 to vector<16x128xf32>
    %18 = arith.maximumf %16, %17 : vector<16x128xf32>
    %c0_15 = arith.constant 0 : index
    %c0_16 = arith.constant 0 : index
    %c0_17 = arith.constant 0 : index
    %19 = vector.load %arg7[%c0_15, %c0_16, %c0_17] : memref<1x3x128xf32, #tpu.memory_space<vmem>>, vector<1x3x128xf32>
    %20 = vector.shape_cast %19 : vector<1x3x128xf32> to vector<3x128xf32>
    %21 = arith.truncf %18 : vector<16x128xf32> to vector<16x128xbf16>
    %c0_18 = arith.constant 0 : index
    %c0_19 = arith.constant 0 : index
    %c0_20 = arith.constant 0 : index
    %22 = vector.load %arg6[%c0_18, %c0_19, %c0_20] : memref<1x128x128xbf16, #tpu.memory_space<vmem>>, vector<1x128x128xbf16>
    %23 = vector.shape_cast %22 : vector<1x128x128xbf16> to vector<128x128xbf16>
    %cst_21 = arith.constant dense<0.000000e+00> : vector<16x128xf32>
    %24 = tpu.matmul %21, %23, %cst_21 {dimension_numbers = #tpu.dot_dimension_numbers<[1], [0], [0], [1], [0, 0, 1, 1], [], []>} : vector<16x128xbf16>, vector<128x128xbf16>, vector<16x128xf32> -> vector<16x128xf32>
    %25 = vector.extract_strided_slice %20 {offsets = [0, 0], sizes = [1, 128], strides = [1, 1]} : vector<3x128xf32> to vector<1x128xf32>
    %26 = vector.broadcast %25 : vector<1x128xf32> to vector<16x128xf32>
    %27 = arith.addf %24, %26 : vector<16x128xf32>
    %cst_22 = arith.constant dense<0.000000e+00> : vector<128xf32>
    %28 = vector.multi_reduction <add>, %27, %cst_22 [0] : vector<16x128xf32> to vector<128xf32>
    %29 = vector.shape_cast %28 : vector<128xf32> to vector<1x128xf32>
    %cst_23 = arith.constant 1.600000e+01 : f32
    %30 = vector.broadcast %cst_23 : f32 to vector<1x128xf32>
    %31 = arith.divf %29, %30 : vector<1x128xf32>
    %32 = vector.broadcast %31 : vector<1x128xf32> to vector<16x128xf32>
    %33 = arith.subf %27, %32 : vector<16x128xf32>
    %34 = arith.mulf %33, %33 : vector<16x128xf32>
    %cst_24 = arith.constant dense<0.000000e+00> : vector<128xf32>
    %35 = vector.multi_reduction <add>, %34, %cst_24 [0] : vector<16x128xf32> to vector<128xf32>
    %36 = vector.shape_cast %35 : vector<128xf32> to vector<1x128xf32>
    %cst_25 = arith.constant 1.600000e+01 : f32
    %37 = vector.broadcast %cst_25 : f32 to vector<1x128xf32>
    %38 = arith.divf %36, %37 : vector<1x128xf32>
    %39 = vector.extract_strided_slice %20 {offsets = [1, 0], sizes = [1, 128], strides = [1, 1]} : vector<3x128xf32> to vector<1x128xf32>
    %cst_26 = arith.constant 9.99999974E-6 : f32
    %40 = vector.broadcast %cst_26 : f32 to vector<1x128xf32>
    %41 = arith.addf %38, %40 : vector<1x128xf32>
    %42 = math.rsqrt %41 : vector<1x128xf32>
    %43 = arith.mulf %39, %42 : vector<1x128xf32>
    %44 = vector.extract_strided_slice %20 {offsets = [2, 0], sizes = [1, 128], strides = [1, 1]} : vector<3x128xf32> to vector<1x128xf32>
    %45 = arith.mulf %31, %43 : vector<1x128xf32>
    %46 = arith.subf %44, %45 : vector<1x128xf32>
    %47 = vector.broadcast %43 : vector<1x128xf32> to vector<16x128xf32>
    %48 = arith.mulf %27, %47 : vector<16x128xf32>
    %49 = vector.broadcast %46 : vector<1x128xf32> to vector<16x128xf32>
    %50 = arith.addf %48, %49 : vector<16x128xf32>
    %c1_i32 = arith.constant 1 : i32
    %51 = arith.cmpi ne, %arg0, %c1_i32 : i32
    %52 = arith.extui %51 : i1 to i32
    %c0_i32_27 = arith.constant 0 : i32
    %53 = arith.cmpi ne, %52, %c0_i32_27 : i32
    scf.if %53 {
      %cst_30 = arith.constant 0.000000e+00 : f32
      %57 = vector.broadcast %cst_30 : f32 to vector<16x128xf32>
      %58 = arith.maximumf %50, %57 : vector<16x128xf32>
      %59 = arith.truncf %58 : vector<16x128xf32> to vector<16x128xbf16>
      %c0_31 = arith.constant 0 : index
      %c0_32 = arith.constant 0 : index
      %60 = vector.load %arg10[%c0_31, %c0_32] : memref<16x128xbf16, #tpu.memory_space<vmem>>, vector<16x128xbf16>
      tpu.vector_store %arg10[%c0_31, %c0_32], %59 {strides = array<i32>} : memref<16x128xbf16, #tpu.memory_space<vmem>>, vector<16x128xbf16>,
    } else {
    }
    %c1_i32_28 = arith.constant 1 : i32
    %54 = arith.cmpi eq, %arg0, %c1_i32_28 : i32
    %55 = arith.extui %54 : i1 to i32
    %c0_i32_29 = arith.constant 0 : i32
    %56 = arith.cmpi ne, %55, %c0_i32_29 : i32
    scf.if %56 {
      %c0_30 = arith.constant 0 : index
      %c0_31 = arith.constant 0 : index
      %57 = vector.load %arg8[%c0_30, %c0_31] : memref<16x128xf32, #tpu.memory_space<vmem>>, vector<16x128xf32>
      tpu.vector_store %arg8[%c0_30, %c0_31], %50 {strides = array<i32>} : memref<16x128xf32, #tpu.memory_space<vmem>>, vector<16x128xf32>,
    } else {
    }
    return
  }
  func.func @transform_2(%arg0: i32) -> (i32, i32, i32) {
    %c0_i32 = arith.constant 0 : i32
    %c0_i32_0 = arith.constant 0 : i32
    %c0_i32_1 = arith.constant 0 : i32
    return %arg0, %c0_i32, %c0_i32_0 : i32, i32, i32
  }
  func.func @transform_3(%arg0: i32) -> (i32, i32, i32) {
    %c0_i32 = arith.constant 0 : i32
    %c0_i32_0 = arith.constant 0 : i32
    %c0_i32_1 = arith.constant 0 : i32
    return %arg0, %c0_i32, %c0_i32_0 : i32, i32, i32
  }
  func.func @transform_4(%arg0: i32) -> (i32, i32, i32) {
    %c0_i32 = arith.constant 0 : i32
    %c0_i32_0 = arith.constant 0 : i32
    %c0_i32_1 = arith.constant 0 : i32
    return %arg0, %c0_i32, %c0_i32_0 : i32, i32, i32
  }
  func.func @transform_5(%arg0: i32) -> (i32, i32, i32) {
    %c0_i32 = arith.constant 0 : i32
    %c0_i32_0 = arith.constant 0 : i32
    %c0_i32_1 = arith.constant 0 : i32
    return %arg0, %c0_i32, %c0_i32_0 : i32, i32, i32
  }
  func.func @transform_6(%arg0: i32) -> (i32, i32, i32) {
    %c0_i32 = arith.constant 0 : i32
    %c0_i32_0 = arith.constant 0 : i32
    %c0_i32_1 = arith.constant 0 : i32
    return %arg0, %c0_i32, %c0_i32_0 : i32, i32, i32
  }
  func.func @transform_7(%arg0: i32) -> (i32, i32) {
    %c0_i32 = arith.constant 0 : i32
    %c0_i32_0 = arith.constant 0 : i32
    %c0_i32_1 = arith.constant 0 : i32
    return %c0_i32, %c0_i32_0 : i32, i32
  }
}

</mosaic_0001>

<bundles_post_ra>
// kernel: tpu_custom_call.1
= control target key start
LH: loop header
LB: loop body
LE: loop exit
PB: predicated region body
PF: predicated region fallthrough
CT: control target
= control target key end

     0   :  { %s1607_s0 = inlined_call_operand.vmem [shape: bf16[16,128], index: 0, kind: input, shape index: {}]   ;;  %s1608_s1 = inlined_call_operand.vmem [shape: bf16[16,16], index: 1, kind: input, shape index: {}]   ;;  %s1609_s2 = inlined_call_operand.hbm [shape: f32[2,16,128], index: 2, kind: input, shape index: {}]   ;;  %s1610_s3 = inlined_call_operand.hbm [shape: bf16[2,128,128], index: 3, kind: input, shape index: {}]   ;;  %s1611_s4 = inlined_call_operand.vmem [shape: f32[2,1,128], index: 4, kind: input, shape index: {}]   ;;  %s1612_s5 = inlined_call_operand.hbm [shape: bf16[2,128,128], index: 5, kind: input, shape index: {}]   ;;  %s1613_s6 = inlined_call_operand.vmem [shape: f32[2,3,128], index: 6, kind: input, shape index: {}]   ;;  %s1614_s7 = inlined_call_operand.hbm [shape: f32[16,128], index: 7, kind: output, shape index: {}]  }
   0x1   :  { %1618 = sst [smem:[#allocation20_spill]] %s1610_s3 }
   0x2   :  { %12 = vsyncpa [#allocation5], 0 }
   0x3   :  { %14 = vsyncpa [#allocation5 + $0x1], 0 }
   0x4   :  { %15 = vsyncpa [#allocation8], 0 }
   0x5   :  { %17 = vsyncpa [#allocation8 + $0x1], 0 }
   0x6   :  { %18 = vsyncpa [#allocation6], 0  ;;  %s1316_s24 = smov 0   ;;  %s1318_s25 = smov 0  }
   0x7   :  { %s1320_s26 = smov 0   ;;  %s1322_s27 = smov 0  }
   0x8 LB: > { %s1335_s28 = sadd.s32 4294967295, %s1262_s27   ;;  %s1338_s29 = sadd.s32 1, %s1262_s27   ;;  %s1262_s27 = sphi %s1322_s27, %s1631_s27   ;;  %s1258_s26 = sphi %s1320_s26, %s1630_s26   ;;  %s1254_s25 = sphi %s1318_s25, %s1629_s25   ;;  %s1250_s24 = sphi %s1316_s24, %s1628_s24  }
   0x9   : > { %s28_s30 = ssub.s32 %s1262_s27, %s1338_s29  ;;  %s31_s8 = sadd.s32 1, %s1258_s26 }
   0xa   : > { %p29_p0 = scmp.eq.s32.totalorder %s28_s30, 0  ;;  %p38_p1 = scmp.ne.s32.totalorder %s1258_s26, %s1254_s25 }
   0xb   : > { %p39_p2 = scmp.eq.s32.totalorder %s1262_s27, 0  ;;  %p44_p3 = scmp.ne.s32.totalorder %s1254_s25, %s1250_s24 }
   0xc   : > { %s1348_s9 = scalar_select %p29_p0, %s1258_s26, %s31_s8  }
   0xd   : > { %p40_p4 = por %p39_p2, %p38_p1  ;;  %p45_p5 = scmp.eq.s32.totalorder %s1335_s28, 0 }
   0xe   : > { %p1038_p6 = scmp.lt.s32.totalorder %s1262_s27, 2  ;;  %s1357_s11 = sand.u32 1, %s1258_s26  }
   0xf   : > { %p1352_p7 = por %p45_p5, %p44_p3  ;;  %s214_s13 = sand.u32 1, %s1262_s27  }
  0x10   : > { %p1359_p8 = pnand %p1038_p6, %p40_p4  ;;  %s913_s14 = sshll.u32 %s1357_s11, 6 }
  0x11   : > { %s1619_s10 = scalar_select %p1352_p7, 1, 0 }
  0x12   : > { %s950_s15 = sshll.u32 %s1262_s27, 10  ;;  %s218_s16 = scalar_lea.vmem [#allocation7], %s913_s14 }
  0x13   : > { %s225_s17 = sshll.u32 %s218_s16, 4  ;;  %s1621_s3 = sld [smem:[#allocation20_spill]]  ;;  %s1375_s17 = int_to_ptr.vmem [resolvable:$true] %s225_s17 }
  0x14   : > { %s1377_s21 = scalar_lea.sflag [#allocation8], %s214_s13  ;;  %p1383_p10 = pneg %p1359_p8 }
  0x19   : > { %s1373_s20 = scalar_lea.hbm %s1621_s3, %s950_s15  ;;  %s1105_s8 = scalar_lea.hbm %s1621_s3, 2048 }
  0x1a   : > { %s1100_s22 = scalar_lea.hbm %s1373_s20, 1024  ;;  %p1106_p13 = scmp.lt.u32.totalorder %s1373_s20, %s1621_s3 }
  0x1b   : > { %p1101_p9 = scmp.ne.s32.totalorder %s1373_s20, %s1100_s22  ;;  %p1107_p0 = scmp.lt.u32.totalorder %s1105_s8, %s1100_s22 }
  0x1c   : > { %p1109_p2 = scmp.lt.u32.totalorder %s1100_s22, %s1373_s20 }
  0x1d   : > { %p1103_p11 = pnand %p1383_p10, %p1101_p9  ;;  %p1108_p1 = por %p1107_p0, %p1106_p13 }
  0x1f   : > { %p1104_p12 = pneg %p1103_p11  ;;  %p1110_p3 = por %p1109_p2, %p1108_p1 }
  0x21   : > { %p1111_p4 = pnand %p1110_p3, %p1104_p12 }
  0x23   : > { %1114 = shalt.err (!%p1111_p4)
}
  0x24   : > { %s1115_s13 = scalar_lea.vmem %s1375_s17, 1024  ;;  %s1264_s19 = smov [#allocation7]  }
  0x25   : > { %p1116_p5 = scmp.ne.s32.totalorder %s1375_s17, %s1115_s13  ;;  %s1120_s24 = sshll.u32 %s1264_s19, 4  ;;  %s1121_s24 = int_to_ptr.vmem [resolvable:$false] %s1120_s24 }
  0x26   : > { %s1122_s30 = scalar_lea.vmem %s1121_s24, 2048  ;;  %p1123_p11 = scmp.lt.s32.totalorder %s1375_s17, %s1121_s24 }
  0x27   : > { %p1118_p6 = pnand %p1116_p5, %p1383_p10  ;;  %p1124_p7 = scmp.lt.s32.totalorder %s1122_s30, %s1115_s13 }
  0x29   : > { %p1119_p9 = pneg %p1118_p6  ;;  %p1125_p13 = por %p1124_p7, %p1123_p11 }
  0x2b   : > { %p1126_p0 = pnand %p1125_p13, %p1119_p9 }
  0x2d   : > { %1129 = shalt.err (!%p1126_p0)
}
  0x2e   : > { %s1616_s22 = smov 64   ;;  %s1617_s8 = smov 4  }
  0x2f   : > { %1034 = dma.hbm_to_vmem [thread:$0]  (!%p1359_p8), %s1373_s20, 1024, %s1375_s17, %s1377_s21, %s1616_s22, %s1616_s22, %s1617_s8  }
  0x30   : > { %s1415_s13 = scalar_lea.hbm %s1612_s5, %s950_s15  ;;  %s245_s19 = scalar_lea.vmem [#allocation9], %s913_s14 }
  0x31   : > { %s252_s24 = sshll.u32 %s245_s19, 4  ;;  %p919_p7 = scmp.ge.s32.totalorder %s1262_s27, 1  ;;  %s1420_s24 = int_to_ptr.vmem [resolvable:$true] %s252_s24 }
  0x32   : > { %p267_p12 = scmp.lt.s32.totalorder %s1262_s27, 3  ;;  %s910_s30 = sshll.u32 %s1357_s11, 4 }
  0x33   : > { %s949_s17 = sshll.u32 %s1262_s27, 8  ;;  %s197_s20 = scalar_lea.vmem [#allocation4], %s910_s30 }
  0x34   : > { %p1424_p1 = pnand %p919_p7, %p267_p12  ;;  %s204_s22 = sshll.u32 %s197_s20, 4  ;;  %s1434_s22 = int_to_ptr.vmem [resolvable:$true] %s204_s22 }
  0x35   : > { %s1432_s15 = scalar_lea.hbm %s1609_s2, %s949_s17  ;;  %s194_s14 = scalar_lea.sflag [#allocation5], %s1357_s11 }
  0x36   : > { %s1623_s3 = scalar_select %p1424_p1, 1, 0 }
  0x37   : > { %s1130_s18 = scalar_lea.hbm %s1432_s15, 256  ;;  %s1135_s30 = scalar_lea.hbm %s1609_s2, 512 }
  0x38   : > { %p1131_p2 = scmp.ne.s32.totalorder %s1432_s15, %s1130_s18  ;;  %p1136_p5 = scmp.lt.u32.totalorder %s1432_s15, %s1609_s2 }
  0x39   : > { %p1137_p6 = scmp.lt.u32.totalorder %s1135_s30, %s1130_s18  ;;  %p1139_p11 = scmp.lt.u32.totalorder %s1130_s18, %s1432_s15 }
  0x3a   : > { %p1133_p3 = pnand %p1131_p2, %p1383_p10 }
  0x3b   : > { %p1138_p9 = por %p1137_p6, %p1136_p5 }
  0x3c   : > { %p1134_p4 = pneg %p1133_p3 }
  0x3d   : > { %p1140_p13 = por %p1139_p11, %p1138_p9 }
  0x3f   : > { %p1141_p0 = pnand %p1140_p13, %p1134_p4 }
  0x41   : > { %1144 = shalt.err (!%p1141_p0)
}
  0x42   : > { %s1145_s17 = scalar_lea.vmem %s1434_s22, 256  ;;  %s1267_s16 = smov [#allocation4]  }
  0x43   : > { %p1146_p7 = scmp.ne.s32.totalorder %s1434_s22, %s1145_s17  ;;  %s1150_s27 = sshll.u32 %s1267_s16, 4  ;;  %s1151_s27 = int_to_ptr.vmem [resolvable:$false] %s1150_s27 }
  0x44   : > { %s1152_s19 = scalar_lea.vmem %s1151_s27, 512  ;;  %p1153_p3 = scmp.lt.s32.totalorder %s1434_s22, %s1151_s27 }
  0x45   : > { %p1148_p12 = pnand %p1146_p7, %p1383_p10  ;;  %p1154_p1 = scmp.lt.s32.totalorder %s1152_s19, %s1145_s17 }
  0x47   : > { %p1149_p2 = pneg %p1148_p12  ;;  %p1155_p5 = por %p1154_p1, %p1153_p3 }
  0x49   : > { %p1156_p6 = pnand %p1155_p5, %p1149_p2 }
  0x4b   : > { %1159 = shalt.err (!%p1156_p6)
}
  0x4c   : > { %s1268_s18 = smov 128   ;;  %s1269_s30 = smov 8  }
  0x4d   : > { %1031 = dma.hbm_to_vmem [thread:$0]  (!%p1359_p8), %s1432_s15, 256, %s1434_s22, %s194_s14, %s1268_s18, %s1268_s18, %s1269_s30  }
  0x4e   : > { %s1160_s20 = scalar_lea.hbm %s1415_s13, 1024  ;;  %s1165_s16 = scalar_lea.hbm %s1612_s5, 2048 }
  0x4f   : > { %p1161_p4 = scmp.ne.s32.totalorder %s1415_s13, %s1160_s20  ;;  %p1166_p11 = scmp.lt.u32.totalorder %s1415_s13, %s1612_s5 }
  0x50   : > { %p1167_p13 = scmp.lt.u32.totalorder %s1165_s16, %s1160_s20  ;;  %p1169_p7 = scmp.lt.u32.totalorder %s1160_s20, %s1415_s13 }
  0x51   : > { %p1163_p1 = pnand %p1161_p4, %p1383_p10 }
  0x52   : > { %p1168_p0 = por %p1167_p13, %p1166_p11 }
  0x53   : > { %p1164_p9 = pneg %p1163_p1 }
  0x54   : > { %p1170_p12 = por %p1169_p7, %p1168_p0 }
  0x56   : > { %p1171_p2 = pnand %p1170_p12, %p1164_p9 }
  0x58   : > { %1174 = shalt.err (!%p1171_p2)
}
  0x59   : > { %s1175_s11 = scalar_lea.vmem %s1420_s24, 1024  ;;  %s1270_s22 = smov [#allocation9]  }
  0x5a   : > { %p1176_p3 = scmp.ne.s32.totalorder %s1420_s24, %s1175_s11  ;;  %s1180_s15 = sshll.u32 %s1270_s22, 4  ;;  %s1181_s15 = int_to_ptr.vmem [resolvable:$false] %s1180_s15 }
  0x5b   : > { %s1182_s14 = scalar_lea.vmem %s1181_s15, 2048  ;;  %p1183_p4 = scmp.lt.s32.totalorder %s1420_s24, %s1181_s15 }
  0x5c   : > { %p1178_p5 = pnand %p1176_p3, %p1383_p10  ;;  %p1184_p1 = scmp.lt.s32.totalorder %s1182_s14, %s1175_s11 }
  0x5e   : > { %p1179_p6 = pneg %p1178_p5  ;;  %p1185_p11 = por %p1184_p1, %p1183_p4 }
  0x60   : > { %p1186_p13 = pnand %p1185_p11, %p1179_p6 }
  0x62   : > { %1189 = shalt.err (!%p1186_p13)
}
  0x63   : > { %s1624_s18 = smov 4   ;;  %s1625_s30 = smov 64  }
  0x64   : > { %1037 = dma.hbm_to_vmem [thread:$0]  (!%p1359_p8), %s1415_s13, 1024, %s1420_s24, %s1377_s21, %s1625_s30, %s1625_s30, %s1624_s18  }
  0x65   : > { %p1626_p10 = scmp.ne.s32.totalorder %s1623_s3, 0 }
  0x66   : > { %s273_s23 = sand.u32 (!%p1626_p10), 1, %s1254_s25   ;;  %p1627_p9 = scmp.ne.s32.totalorder (!%p1626_p10), %s1619_s10, 0 }
  0x67   : > { %271 = sbr.rel (%p1626_p10) target bundleno = 896 (0x380), region = 40  ;;  %s920_s20 = sshll.u32 (!%p1626_p10), %s273_s23, 4 }
  0x68   : > { %s274_s8 = scalar_lea.sflag (!%p1626_p10), [#allocation5], %s273_s23  ;;  %s1488_s17 = scalar_lea.vmem (!%p1626_p10), [#allocation4], %s920_s20 }
  0x6e   : > { %1233 = dma.done.wait (%p1627_p9), %s274_s8, 256  }
  0x6f   : > { %1235 = vsyncadd (%p1627_p9), %s274_s8, 4294967040  ;;  %s282_s12 = sand.u32 1, %s1335_s28   ;;  %s921_s16 = sshll.u32 %s273_s23, 6 }
  0x70   : > { %s283_s21 = scalar_lea.sflag [#allocation8], %s282_s12  ;;  %s1495_s13 = scalar_lea.vmem [#allocation7], %s921_s16 }
  0x71   : > { %1237 = dma.done.wait (%p1627_p9), %s283_s21, 2048  }
  0x72   : > { %1239 = vsyncadd (%p1627_p9), %s283_s21, 4294965248  ;;  %p334_p8 = scmp.lt.s32.totalorder %s1335_s28, 1  ;;  %s1515_s18 = scalar_lea.vmem [#allocation9], %s921_s16 }
  0x73   : > { %p924_p0 = scmp.ne.s32.totalorder %s1335_s28, 0 }
  0x74   : > { %s1503_s3 = scalar_select %p334_p8, %s1335_s28, 1 }
  0x75   : > { %345 = sbr.rel (%p924_p0) target bundleno = 134 (0x86), region = 56 }
  0x76   : > { %s336_s19 = scalar_lea.vmem %s1611_s4, %s1503_s3  ;;  %s923_s11 = sshll.u32 %s1503_s3, 2 }
  0x77   : > { %s1513_s14 = scalar_lea.vmem %s1613_s6, %s923_s11 }
  0x7c   : > { %v378_v0 = vld [vmem:[%s1608_s1] sm:$0xff] }
  0x7d   : > { %379 = vst [vmem:[#allocation2] sm:$0xff] %v378_v0 }
  0x7e   : > { %387 = vsyncadd [#allocation11], 128 }
  0x7f   : > { %1240 = dma.done.wait [#allocation11], 128 }
  0x80   : > { %1241 = vsyncadd [#allocation11], 4294967168 }
  0x81   : > { %v424_v1 = vld [vmem:[%s1607_s0] sm:$0xff] }
  0x82   : > { %425 = vst [vmem:[#allocation3] sm:$0xff] %v424_v1 }
  0x83   : > { %433 = vsyncadd [#allocation13], 128 }
  0x84   : > { %1242 = dma.done.wait [#allocation13], 128 }
  0x85   : > { %1243 = vsyncadd [#allocation13], 4294967168 }
  0x86 PF: > { %v1082_v3 = vld [vmem:[%s1495_s13] sm:$0xff]   ;;  %v1271_v4 = vmov 0.0   ;;  %vm1272_vm0 = vmmov 0   ;;  %v438_v5 = vld [vmem:[#allocation2] sm:$0xff]  ;;  %vm442_vm1 = vcmask 130048   ;;  %v1083_v6 = vld [vmem:[%s1495_s13 + $0x8] sm:$0xff]   ;;  %v620_v40 = vlaneseq }
  0x87   : > { %972 = vmatprep.subr.bf16.mxu0 %v1271_v4  ;;  %974 = vmatprep.mubr.msk.bf16.mxu0 %vm1272_vm0, %v1271_v4  ;;  %v1084_v7 = vld [vmem:[%s1495_s13 + $0x10] sm:$0xff]   ;;  %v1085_v8 = vld [vmem:[%s1495_s13 + $0x18] sm:$0xff]   ;;  %v1086_v9 = vld [vmem:[%s1495_s13 + $0x20] sm:$0xff]   ;;  %p943_p7 = scmp.eq.s32.totalorder %s1335_s28, 1 }
  0x88   : > { %978 = vmatprep.subr.bf16.mxu1 %v1271_v4  ;;  %994 = vmatprep.mubr.msk.bf16.mxu1 %vm1272_vm0, %v1271_v4  ;;  %v1087_v10 = vld [vmem:[%s1495_s13 + $0x28] sm:$0xff]   ;;  %v1088_v11 = vld [vmem:[%s1495_s13 + $0x30] sm:$0xff]   ;;  %v1089_v12 = vld [vmem:[%s1495_s13 + $0x38] sm:$0xff]   ;;  %v621_v41 = vshrl.u32 %v620_v40, 7 }
  0x89   : > { %v439_v2 = vld [vmem:[#allocation3] sm:$0xff]  ;;  %979 = vmatpush3.bf16.msra.mxu1 %v1082_v3  ;;  %v1090_v13 = vld [vmem:[%s1515_s18] sm:$0xff]   ;;  %v1091_v14 = vld [vmem:[%s1515_s18 + $0x8] sm:$0xff]  }
  0x8a   : > { %973 = vmatpush3.bf16.msra.mxu0 %v439_v2  ;;  %980 = vmatprep.subr.bf16.mxu1 %v1271_v4  ;;  %v1092_v15 = vld [vmem:[%s1515_s18 + $0x10] sm:$0xff]   ;;  %v1093_v16 = vld [vmem:[%s1515_s18 + $0x18] sm:$0xff]   ;;  %v1094_v17 = vld [vmem:[%s1515_s18 + $0x20] sm:$0xff]   ;;  %v622_v42 = vsub.s32 0, %v621_v41 }
  0x8b   : > { %998 = vmatprep.subr.bf16.mxu0 %v1271_v4  ;;  %v1095_v18 = vld [vmem:[%s1515_s18 + $0x28] sm:$0xff]   ;;  %v440_v19 = vld [vmem:[%s1488_s17] sm:$0xff]  ;;  %v1097_v29 = vld [vmem:[%s1515_s18 + $0x38] sm:$0xff]  }
  0x8c   : > { %v441_v21 = vld [vmem:[%s1488_s17 + $0x8] sm:$0xff]  ;;  %v1096_v28 = vld [vmem:[%s1515_s18 + $0x30] sm:$0xff]  }
  0x8d   : > { %975 = vmatmul.mubr.msk.bf16.vlgmr.msra.gmra.mrb[0].mxu0 %vm442_vm1, %v438_v5  ;;  %981 = vmatpush3.bf16.msra.mxu1 %v1083_v6  ;;  %v926_v30 = vld [vmem:[%s336_s19] ss:$0 sm:$0xff] }
  0x8e   : > { %1014 = vmatprep.mubr.msk.bf16.mxu0 %vm1272_vm0, %v1271_v4  ;;  %982 = vmatprep.subr.bf16.mxu1 %v1271_v4  ;;  %v602_v43 = vld [vmem:[%s1513_s14] sm:$0x7] }
  0x8f   : > { %999 = vmatpush3.bf16.msra.mxu0 %v1090_v13  ;;  %v623_v44 = vrot.slane %v602_v43, %v622_v42 }
  0x90   : > { %1000 = vmatprep.subr.bf16.mxu0 %v1271_v4 }
  0x91   : > { %983 = vmatpush3.bf16.msra.mxu1 %v1084_v7 }
  0x92   : > { %984 = vmatprep.subr.bf16.mxu1 %v1271_v4 }
  0x93   : > { %1001 = vmatpush3.bf16.msra.mxu0 %v1091_v14 }
  0x94   : > { %1002 = vmatprep.subr.bf16.mxu0 %v1271_v4 }
  0x95   : > { %985 = vmatpush3.bf16.msra.mxu1 %v1085_v8  ;;  %v744_v8 = vsub.s32 1, %v621_v41 }
  0x96   : > { %986 = vmatprep.subr.bf16.mxu1 %v1271_v4 }
  0x97   : > { %1003 = vmatpush3.bf16.msra.mxu0 %v1092_v15 }
  0x98   : > { %1004 = vmatprep.subr.bf16.mxu0 %v1271_v4 }
  0x99   : > { %987 = vmatpush3.bf16.msra.mxu1 %v1086_v9 }
  0x9a   : > { %988 = vmatprep.subr.bf16.mxu1 %v1271_v4 }
  0x9b   : > { %1005 = vmatpush3.bf16.msra.mxu0 %v1093_v16  ;;  %v750_v16 = vsub.s32 2, %v621_v41 }
  0x9c   : > { %1006 = vmatprep.subr.bf16.mxu0 %v1271_v4 }
  0x9d   : > { %989 = vmatpush3.bf16.msra.mxu1 %v1087_v10 }
  0x9e   : > { %990 = vmatprep.subr.bf16.mxu1 %v1271_v4 }
  0x9f   : > { %1007 = vmatpush3.bf16.msra.mxu0 %v1094_v17 }
  0xa0   : > { %1008 = vmatprep.subr.bf16.mxu0 %v1271_v4 }
  0xa1   : > { %991 = vmatpush3.bf16.msra.mxu1 %v1088_v11 }
  0xa2   : > { %992 = vmatprep.subr.bf16.mxu1 %v1271_v4 }
  0xa3   : > { %1009 = vmatpush3.bf16.msra.mxu0 %v1095_v18 }
  0xa4   : > { %1010 = vmatprep.subr.bf16.mxu0 %v1271_v4 }
  0xa5   : > { %993 = vmatpush3.bf16.msra.mxu1 %v1089_v12 }
  0xa7   : > { %1011 = vmatpush3.bf16.msra.mxu0 %v1096_v28 }
  0xa8   : > { %1012 = vmatprep.subr.bf16.mxu0 %v1271_v4 }
  0xab   : > { %1013 = vmatpush3.bf16.msra.mxu0 %v1097_v29 }
 0x160   : > { %v480_v20 = vpop.f32.mrb[0].mxu0 }
 0x161   : > { %v976_v22 = vpop.f32.mrb[1].mxu0  ;;  %v481_v24 = vadd.f32 %v480_v20, %v440_v19 }
 0x162   : > { %v483_v23 = vpop.f32.mrb[2].mxu0 }
 0x163   : > { %v484_v25 = vadd.f32 %v483_v23, %v441_v21  ;;  %v977_v26 = vpop.f32.mrb[3].mxu0 }
 0x165   : > { %v487_v27 = vpack.c.bf16 %v484_v25, %v481_v24 }
 0x167   : > { %995 = vmatmul.mubr.bf16.vlgmr.msra.gmra.mrb[0].mxu1 %v487_v27 }
 0x23a   : > { %v593_v31 = vpop.f32.mrb[0].mxu1 }
 0x23b   : > { %v594_v32 = vadd.f32 %v926_v30, %v593_v31  ;;  %v996_v33 = vpop.f32.mrb[1].mxu1 }
 0x23c   : > { %v596_v34 = vpop.f32.mrb[2].mxu1 }
 0x23d   : > { %v597_v35 = vadd.f32 %v926_v30, %v596_v34  ;;  %v997_v36 = vpop.f32.mrb[3].mxu1  ;;  %v600_v37 = vmax.f32 %v594_v32, 0.0 }
 0x23f   : > { %v601_v38 = vmax.f32 %v597_v35, 0.0 }
 0x241   : > { %v603_v39 = vpack.c.bf16 %v601_v38, %v600_v37 }
 0x243   : > { %1015 = vmatmul.mubr.bf16.vlgmr.msra.gmra.mrb[4].mxu0 %v603_v39 }
 0x316   : > { %v706_v45 = vpop.f32.mrb[4].mxu0 }
 0x317   : > { %v1016_v46 = vpop.f32.mrb[5].mxu0  ;;  %v707_v48 = vadd.f32 %v706_v45, %v623_v44 }
 0x318   : > { %v709_v47 = vpop.f32.mrb[6].mxu0 }
 0x319   : > { %v710_v49 = vadd.f32 %v709_v47, %v623_v44  ;;  %v1017_v50 = vpop.f32.mrb[7].mxu0 }
 0x31b   : > { %v713_v51 = vadd.f32 %v710_v49, %v707_v48 }
 0x31d   : > { %v714_v52 = vrot.slane %v713_v51, 4 }
 0x31f   : > { %v715_v53 = vadd.f32 %v714_v52, %v713_v51 }
 0x321   : > { %v716_v54 = vrot.slane %v715_v53, 2 }
 0x323   : > { %v717_v55 = vadd.f32 %v716_v54, %v715_v53 }
 0x325   : > { %v718_v56 = vrot.slane %v717_v55, 1 }
 0x327   : > { %v719_v57 = vadd.f32 %v718_v56, %v717_v55 }
 0x329   : > { %v721_v58 = vmul.f32 0.0625, %v719_v57 }
 0x32b   : > { %v722_v59 = vsub.f32 %v707_v48, %v721_v58  ;;  %v723_v60 = vsub.f32 %v710_v49, %v721_v58 }
 0x32d   : > { %v724_v61 = vmul.f32 %v722_v59, %v722_v59  ;;  %v725_v62 = vmul.f32 %v723_v60, %v723_v60 }
 0x32f   : > { %v726_v63 = vadd.f32 %v725_v62, %v724_v61 }
 0x331   : > { %v727_v0 = vrot.slane %v726_v63, 4 }
 0x333   : > { %v728_v1 = vadd.f32 %v727_v0, %v726_v63 }
 0x335   : > { %v729_v2 = vrot.slane %v728_v1, 2 }
 0x337   : > { %v730_v3 = vadd.f32 %v729_v2, %v728_v1 }
 0x339   : > { %v731_v4 = vrot.slane %v730_v3, 1 }
 0x33b   : > { %v732_v5 = vadd.f32 %v731_v4, %v730_v3 }
 0x33d   : > { %v733_v6 = vmul.f32 0.0625, %v732_v5 }
 0x33f   : > { %v734_v7 = vadd.f32 1e-05, %v733_v6 }
 0x341   : > { %1098 = vrsqrt.f32 %v734_v7 }
 0x34b   : > { %v1099_v9 = vpop.eup %1098 }
 0x34c   : > { %v736_v10 = vmul.f32 %v1099_v9, %v602_v43 }
 0x34e   : > { %v737_v11 = vmul.f32 %v736_v10, %v721_v58  ;;  %v745_v12 = vrot.slane %v736_v10, %v744_v8 }
 0x350   : > { %v739_v13 = vrot.slane %v737_v11, 7  ;;  %v746_v14 = vmul.f32 %v745_v12, %v707_v48  ;;  %v747_v15 = vmul.f32 %v745_v12, %v710_v49  ;;  %757 = sbr.rel (%p943_p7) target bundleno = 861 (0x35d), region = 130 }
 0x352   : > { %v741_v17 = vsub.f32 %v602_v43, %v739_v13 }
 0x354   : > { %v751_v18 = vrot.slane %v741_v17, %v750_v16 }
 0x356   : > { %v752_v19 = vadd.f32 %v751_v18, %v746_v14  ;;  %v753_v20 = vadd.f32 %v751_v18, %v747_v15 }
 0x358   : > { %v758_v21 = vmax.f32 %v752_v19, 0.0  ;;  %v759_v22 = vmax.f32 %v753_v20, 0.0 }
 0x35a   : > { %v760_v23 = vpack.c.bf16 %v759_v22, %v758_v21 }
 0x35c   : > { %761 = vst [vmem:[#allocation3] sm:$0xff] %v760_v23 }
 0x35d PF: > { %p944_p12 = scmp.ne.s32.totalorder %s1335_s28, 1 }
 0x35e   : > { %766 = vst [vmem:[#allocation10] sm:$0xff] (!%p944_p12), %v752_v19  ;;  %767 = vst [vmem:[#allocation10 + $0x8] sm:$0xff] (!%p944_p12), %v753_v20 }
 0x35f   : > { %765 = sbr.rel (%p944_p12) target bundleno = 870 (0x366), region = 134 }
 0x366 PF: > { %s1273_s17 = smov [#allocation10]  }
 0x367   : > { %s774_s16 = sshll.u32 %s1273_s17, 4  ;;  %s775_s16 = int_to_ptr.vmem [resolvable:$true] %s774_s16 }
 0x368   : > { %s1190_s21 = scalar_lea.vmem %s775_s16, 256  ;;  %p1197_p6 = scmp.lt.s32.totalorder %s775_s16, %s775_s16 }
 0x369   : > { %p1191_p2 = scmp.ne.s32.totalorder %s775_s16, %s1190_s21  ;;  %p1198_p4 = scmp.lt.s32.totalorder %s1190_s21, %s1190_s21 }
 0x36b   : > { %p1192_p3 = pnand %p1191_p2, %p943_p7  ;;  %p1199_p1 = por %p1198_p4, %p1197_p6 }
 0x36d   : > { %p1193_p5 = pneg %p1192_p3 }
 0x36f   : > { %p1200_p11 = pnand %p1199_p1, %p1193_p5 }
 0x371   : > { %1203 = shalt.err (!%p1200_p11)
}
 0x372   : > { %s1204_s24 = scalar_lea.hbm %s1614_s7, 256 }
 0x373   : > { %p1205_p13 = scmp.ne.s32.totalorder %s1614_s7, %s1204_s24  ;;  %p1210_p8 = scmp.lt.u32.totalorder %s1204_s24, %s1614_s7 }
 0x375   : > { %p1206_p10 = pnand %p1205_p13, %p943_p7 }
 0x377   : > { %p1207_p9 = pneg %p1206_p10 }
 0x379   : > { %p1212_p0 = pnand %p1210_p8, %p1207_p9 }
 0x37b   : > { %1215 = shalt.err (!%p1212_p0)
}
 0x37c   : > { %s1274_s15 = smov 128   ;;  %s1275_s14 = smov 8  }
 0x37d   : > { %1025 = dma.vmem_to_hbm [thread:$0]  (%p943_p7), %s775_s16, 256, %s1614_s7, [#allocation6], %s1274_s15, %s1274_s15, %s1275_s14  }
 0x37e   : > { %1245 = dma.done.wait (%p943_p7), [#allocation6], 256  }
 0x37f   : > { %1247 = vsyncadd (%p943_p7), [#allocation6], 4294967040 }
 0x380 PF: > { %p21_p12 = scmp.ge.s32.totalorder %s1338_s29, 4   ;;  %s1628_s24 = smov %s1254_s25 }
 0x381   : > { %s1629_s25 = smov %s1258_s26  ;;  %s1630_s26 = smov %s1348_s9 }
 0x382   : > { %s1631_s27 = smov %s1338_s29  ;;  %23 = sbr.rel (!%p21_p12) target bundleno = 8 (0x8), region = 205 }
 0x389   :  { %790 = vsyncpa [#allocation5], 1 }
 0x38a   :  { %792 = vsyncpa [#allocation5 + $0x1], 1 }
 0x38b   :  { %793 = vsyncpa [#allocation8], 1 }
 0x38c   :  { %795 = vsyncpa [#allocation8 + $0x1], 1 }
 0x38d   :  { %796 = vsyncpa [#allocation6], 1 }
 0x38e   :  { %798 = vsyncpa [#allocation6 + $0x1], 1 }

</bundles_post_ra>
